<compile_context>
chip_gen: v5e
topology: v5e:2x2
jax: 0.10.0
libtpu: 0.0.40
codegen_flags: <defaults>
</compile_context>

<pallas_src>
import numpy as np
import jax
import jax.numpy as jnp
from jax import lax
from jax.experimental import pallas as pl
from jax.experimental.pallas import tpu as pltpu


def construct_grid(grid_range, points_per_dim):
    """Regular grid over grid_range, shape (*points_per_dim, dx)."""
    axes = [
        np.linspace(lo, hi, n, dtype=np.float32)
        for (lo, hi), n in zip(grid_range, points_per_dim)
    ]
    mesh = np.meshgrid(*axes, indexing="ij")
    return jnp.asarray(np.stack(mesh, axis=-1))


def _round_up(x, m):
    return ((x + m - 1) // m) * m


def _pick_out_tile(S, pref):
    """Largest multiple of 128 that divides S and is <= pref; else full S."""
    if S % 128 == 0:
        t = max(128, (min(pref, S) // 128) * 128)
        while S % t != 0:
            t -= 128
        return t
    return S  # full-dim fallback (masked stores, still correct)


def _make_kernel(DX, DZ, TS, TK, grid_shape, grid_min, spacing):
    gmin = [float(v) for v in grid_min]
    spc = [float(v) for v in spacing]
    dims = [int(v) for v in grid_shape]

    def kernel(x_ref, zs_ref, lat_ref, out_ref, acc_ref):
        # x_ref   : (DX, TK)       f32   point coordinates, points on lanes
        # zs_ref  : (2*DZ+1, TK)   bf16  [z_hi ; z_lo ; valid(=counts row)]
        # lat_ref : (DZ, TS)       f32   latents slab for this output tile
        # out_ref : (DZ, TS)       f32   z_grid slab (transposed layout)
        # acc_ref : (2*DZ+1, TS)   f32   running [sums_hi ; sums_lo ; counts]
        m = pl.program_id(1)
        k = pl.program_id(2)

        @pl.when(k == 0)
        def _init():
            acc_ref[...] = jnp.zeros_like(acc_ref)

        # --- nearest grid cell per point: lane-vectorized, int32 Horner ---
        idx = jnp.zeros((1, TK), jnp.int32)
        for d in range(DX):
            xd = x_ref[d:d + 1, :]                                  # (1, TK)
            md = jnp.floor((xd - gmin[d] + 0.5 * spc[d]) / spc[d])
            md = jnp.clip(md, 0.0, float(dims[d] - 1)).astype(jnp.int32)
            idx = idx * dims[d] + md        # exact int32 (no f32 strides)

        # --- exact 0/1 one-hot in bf16: one iota, one compare, one cast ---
        loc = idx - m * TS                   # cell index local to this m tile
        cell = lax.broadcasted_iota(jnp.int32, (TS, TK), 0)
        # i1 -> f32 -> bf16 (direct i1->bf16 casts are not uniformly supported)
        onehot = (cell == loc).astype(jnp.float32).astype(jnp.bfloat16)

        # --- single DEFAULT-precision bf16 MXU contraction per (m, k) tile:
        #     [z_hi ; z_lo ; 1] @ onehot^T  ->  partial sums AND counts (f32) ---
        acc_ref[...] += lax.dot_general(
            zs_ref[...], onehot,
            (((1,), (1,)), ((), ())),        # contract last axis of both (q@k.T)
            preferred_element_type=jnp.float32,
        )

        @pl.when(k == pl.num_programs(2) - 1)
        def _finalize():
            acc = acc_ref[...]
            sums = acc[:DZ, :] + acc[DZ:2 * DZ, :]       # recombine hi + lo
            counts = acc[2 * DZ:2 * DZ + 1, :]           # exact integers in f32
            inv = jnp.where(counts > 0.5, 1.0 / jnp.maximum(counts, 1.0), 0.0)
            # nanmean semantics: empty cells contribute 0; z_grid = latents + mean
            out_ref[...] = lat_ref[...] + sums * inv     # lane-dense store

    return kernel


def average_grid_encoder_forward(x, z, grid, latents, *, ts_pref=512, tk_pref=512):
    """Returns (x_grid [B, *grid_shape, DX], z_grid [B, *grid_shape, DZ])."""
    B, N, DX = x.shape
    grid_shape = grid.shape[:-1]
    S = int(np.prod(grid_shape))
    DZ = latents.shape[-1]

    # Tile sizes: output-cell tile TS and point chunk TK, both multiples of 128
    # (lane-dense).  Defaults keep the per-step working set ~1-2 MiB, well
    # inside v7x's 64 MiB VMEM.
    TS = _pick_out_tile(S, ts_pref)
    TK = max(128, (min(tk_pref, _round_up(N, 128)) // 128) * 128)
    N_pad = _round_up(N, TK)

    # Static uniform-grid parameters (f32, as in construct_grid / the reference).
    grid_np = np.asarray(grid, np.float32).reshape(S, DX)
    gmin = grid_np.min(axis=0)
    gmax = grid_np.max(axis=0)
    spacing = (gmax - gmin) / (np.asarray(grid_shape, np.float32) - 1.0)

    # --- lane-dense, MXU-friendly layouts (layout plumbing only) ---
    f32 = jnp.float32
    x_t = jnp.transpose(x.astype(f32), (0, 2, 1))                    # (B, DX, N)
    x_t = jnp.pad(x_t, ((0, 0), (0, 0), (0, N_pad - N)))

    zf = z.astype(f32)
    z_hi = zf.astype(jnp.bfloat16)                                   # bf16 hi
    z_lo = (zf - z_hi.astype(f32)).astype(jnp.bfloat16)              # bf16 lo
    valid = jnp.ones((B, N, 1), jnp.bfloat16)                        # counts row
    zs = jnp.concatenate([z_hi, z_lo, valid], axis=-1)               # (B, N, 2DZ+1)
    zs_t = jnp.transpose(zs, (0, 2, 1))                              # (B, 2DZ+1, N)
    zs_t = jnp.pad(zs_t, ((0, 0), (0, 0), (0, N_pad - N)))           # pad -> 0 contrib

    lat_t = jnp.transpose(latents.astype(f32).reshape(S, DZ))        # (DZ, S); no B tile

    kernel = _make_kernel(DX, DZ, TS, TK, grid_shape, gmin, spacing)

    z_grid_t = pl.pallas_call(
        kernel,
        out_shape=jax.ShapeDtypeStruct((B, DZ, S), jnp.float32),
        grid=(B, S // TS, N_pad // TK),                 # reduction axis last
        in_specs=[
            pl.BlockSpec((None, DX, TK), lambda b, m, k: (b, 0, k)),
            pl.BlockSpec((None, 2 * DZ + 1, TK), lambda b, m, k: (b, 0, k)),
            pl.BlockSpec((DZ, TS), lambda b, m, k: (0, m)),   # batch-agnostic latents
        ],
        out_specs=pl.BlockSpec((None, DZ, TS), lambda b, m, k: (b, 0, m)),
        scratch_shapes=[pltpu.VMEM((2 * DZ + 1, TS), jnp.float32)],
        compiler_params=pltpu.CompilerParams(
            dimension_semantics=("parallel", "parallel", "arbitrary"),
            vmem_limit_bytes=32 * 1024 * 1024,
        ),
    )(x_t, zs_t, lat_t)

    z_grid = jnp.transpose(z_grid_t, (0, 2, 1)).reshape(B, *grid_shape, DZ)
    x_grid = jnp.broadcast_to(grid, (B,) + grid.shape)
    return x_grid, z_grid


def ref_forward(x, z, grid, latents):
    """Pure-JAX reference of the PyTorch forward semantics."""
    B, N, DX = x.shape
    grid_shape = grid.shape[:-1]
    S = int(np.prod(grid_shape))
    DZ = latents.shape[-1]

    gflat = grid.reshape(S, DX)
    gmin = gflat.min(axis=0)
    gmax = gflat.max(axis=0)
    gs = jnp.asarray(grid_shape, jnp.float32)
    spacing = (gmax - gmin) / (gs - 1.0)

    multi = jnp.floor((x - gmin + spacing / 2.0) / spacing)
    multi = jnp.clip(multi, 0.0, gs - 1.0)
    strides = jnp.asarray(pl.strides_from_shape(grid_shape), jnp.float32)
    idx = jnp.sum(multi * strides, axis=-1).astype(jnp.int32)  # (B, N)

    onehot = jax.nn.one_hot(idx, S, dtype=jnp.float32)         # (B, N, S)
    sums = jnp.einsum("bns,bne->bse", onehot, z, precision="highest")
    counts = jnp.sum(onehot, axis=1)                            # (B, S)
    mean = jnp.where(
        counts[..., None] > 0, sums / jnp.maximum(counts[..., None], 1.0), 0.0
    )
    z_grid = latents.reshape(S, DZ)[None] + mean
    z_grid = z_grid.reshape(B, *grid_shape, DZ)
    x_grid = jnp.broadcast_to(grid, (B,) + grid.shape)
    return x_grid, z_grid


if __name__ == "__main__":
    key = jax.random.PRNGKey(0)

    embed_dim = 32
    grid_range = ((-1.0, 1.0), (-1.0, 1.0))

    # (points_per_dim, B, N): the small demo config, plus a config that
    # exercises multiple output tiles and multiple reduction steps.
    configs = [
        ((16, 16), 2, 8),
        ((32, 32), 2, 600),
    ]

    for points_per_dim, B, N in configs:
        DX = len(points_per_dim)
        k_lat, k_x, k_z, key = jax.random.split(key, 4)

        grid = construct_grid(grid_range, points_per_dim)
        latents = jax.random.normal(k_lat, (*points_per_dim, embed_dim),
                                    dtype=jnp.float32)
        x = jax.random.uniform(k_x, (B, N, DX), jnp.float32, -1.0, 1.0)
        z = jax.random.normal(k_z, (B, N, embed_dim), dtype=jnp.float32)

        x_grid, z_grid = average_grid_encoder_forward(x, z, grid, latents)
        jax.block_until_ready((x_grid, z_grid))

        assert x_grid.shape == (B, *points_per_dim, DX)
        assert z_grid.shape == (B, *points_per_dim, embed_dim)

        x_grid_ref, z_grid_ref = ref_forward(x, z, grid, latents)
        np.testing.assert_allclose(np.asarray(x_grid), np.asarray(x_grid_ref),
                                   rtol=0.0, atol=0.0)
        np.testing.assert_allclose(np.asarray(z_grid), np.asarray(z_grid_ref),
                                   rtol=1e-4, atol=1e-4)

    print("KERNEL_OK")
</pallas_src>

<mosaic_0001>
module attributes {stable_mosaic.version = 11 : i64} {
  func.func @kernel(%arg0: i32, %arg1: i32, %arg2: i32, %arg3: memref<1x2x128xf32, #tpu.memory_space<vmem>>, %arg4: memref<1x65x128xbf16, #tpu.memory_space<vmem>>, %arg5: memref<32x256xf32, #tpu.memory_space<vmem>>, %arg6: memref<1x32x256xf32, #tpu.memory_space<vmem>>, %arg7: memref<65x256xf32, #tpu.memory_space<vmem>>) attributes {dimension_semantics = [#tpu.dimension_semantics<parallel>, #tpu.dimension_semantics<parallel>, #tpu.dimension_semantics<arbitrary>], iteration_bounds = array<i64: 2, 1, 1>, scalar_prefetch = 0 : i64, scratch_operands = 1 : i64, tpu.core_type = #tpu.core_type<tc>, window_params = [{transform_indices = @transform_0, window_bounds = array<i64: 1, 2, 128>}, {transform_indices = @transform_1, window_bounds = array<i64: 1, 65, 128>}, {transform_indices = @transform_2, window_bounds = array<i64: 32, 256>}, {transform_indices = @transform_3, window_bounds = array<i64: 1, 32, 256>}]} {
    %c0_i32 = arith.constant 0 : i32
    %0 = arith.cmpi eq, %arg2, %c0_i32 : i32
    %1 = arith.extui %0 : i1 to i32
    %c0_i32_0 = arith.constant 0 : i32
    %2 = arith.cmpi ne, %1, %c0_i32_0 : i32
    scf.if %2 {
      %cst_26 = arith.constant 0.000000e+00 : f32
      %56 = vector.broadcast %cst_26 : f32 to vector<65x256xf32>
      %c0_27 = arith.constant 0 : index
      %c0_28 = arith.constant 0 : index
      %57 = vector.load %arg7[%c0_27, %c0_28] : memref<65x256xf32, #tpu.memory_space<vmem>>, vector<65x256xf32>
      tpu.vector_store %arg7[%c0_27, %c0_28], %56 {strides = array<i32>} : memref<65x256xf32, #tpu.memory_space<vmem>>, vector<65x256xf32>,
    } else {
    }
    %c0_i32_1 = arith.constant 0 : i32
    %3 = vector.broadcast %c0_i32_1 : i32 to vector<1x128xi32>
    %c0 = arith.constant 0 : index
    %c0_2 = arith.constant 0 : index
    %c0_3 = arith.constant 0 : index
    %4 = vector.load %arg3[%c0, %c0_2, %c0_3] : memref<1x2x128xf32, #tpu.memory_space<vmem>>, vector<1x1x128xf32>
    %5 = vector.shape_cast %4 : vector<1x1x128xf32> to vector<1x128xf32>
    %cst = arith.constant -1.000000e+00 : f32
    %6 = vector.broadcast %cst : f32 to vector<1x128xf32>
    %7 = arith.subf %5, %6 : vector<1x128xf32>
    %cst_4 = arith.constant 0.0666666701 : f32
    %8 = vector.broadcast %cst_4 : f32 to vector<1x128xf32>
    %9 = arith.addf %7, %8 : vector<1x128xf32>
    %cst_5 = arith.constant 0.13333334 : f32
    %10 = vector.broadcast %cst_5 : f32 to vector<1x128xf32>
    %11 = arith.divf %9, %10 : vector<1x128xf32>
    %12 = math.floor %11 : vector<1x128xf32>
    %cst_6 = arith.constant 0.000000e+00 : f32
    %cst_7 = arith.constant 1.500000e+01 : f32
    %13 = vector.broadcast %cst_6 : f32 to vector<1x128xf32>
    %14 = arith.maximumf %13, %12 : vector<1x128xf32>
    %15 = vector.broadcast %cst_7 : f32 to vector<1x128xf32>
    %16 = arith.minimumf %15, %14 : vector<1x128xf32>
    %17 = arith.fptosi %16 : vector<1x128xf32> to vector<1x128xi32>
    %c16_i32 = arith.constant 16 : i32
    %18 = vector.broadcast %c16_i32 : i32 to vector<1x128xi32>
    %19 = arith.muli %3, %18 : vector<1x128xi32>
    %20 = arith.addi %19, %17 : vector<1x128xi32>
    %c0_8 = arith.constant 0 : index
    %c1 = arith.constant 1 : index
    %c0_9 = arith.constant 0 : index
    %21 = vector.load %arg3[%c0_8, %c1, %c0_9] : memref<1x2x128xf32, #tpu.memory_space<vmem>>, vector<1x1x128xf32>
    %22 = vector.shape_cast %21 : vector<1x1x128xf32> to vector<1x128xf32>
    %cst_10 = arith.constant -1.000000e+00 : f32
    %23 = vector.broadcast %cst_10 : f32 to vector<1x128xf32>
    %24 = arith.subf %22, %23 : vector<1x128xf32>
    %cst_11 = arith.constant 0.0666666701 : f32
    %25 = vector.broadcast %cst_11 : f32 to vector<1x128xf32>
    %26 = arith.addf %24, %25 : vector<1x128xf32>
    %cst_12 = arith.constant 0.13333334 : f32
    %27 = vector.broadcast %cst_12 : f32 to vector<1x128xf32>
    %28 = arith.divf %26, %27 : vector<1x128xf32>
    %29 = math.floor %28 : vector<1x128xf32>
    %cst_13 = arith.constant 0.000000e+00 : f32
    %cst_14 = arith.constant 1.500000e+01 : f32
    %30 = vector.broadcast %cst_13 : f32 to vector<1x128xf32>
    %31 = arith.maximumf %30, %29 : vector<1x128xf32>
    %32 = vector.broadcast %cst_14 : f32 to vector<1x128xf32>
    %33 = arith.minimumf %32, %31 : vector<1x128xf32>
    %34 = arith.fptosi %33 : vector<1x128xf32> to vector<1x128xi32>
    %c16_i32_15 = arith.constant 16 : i32
    %35 = vector.broadcast %c16_i32_15 : i32 to vector<1x128xi32>
    %36 = arith.muli %20, %35 : vector<1x128xi32>
    %37 = arith.addi %36, %34 : vector<1x128xi32>
    %c256_i32 = arith.constant 256 : i32
    %38 = arith.muli %arg1, %c256_i32 : i32
    %39 = vector.broadcast %38 : i32 to vector<1x128xi32>
    %40 = arith.subi %37, %39 : vector<1x128xi32>
    %41 = tpu.iota {dimensions = array<i32: 0>} : vector<256x128xi32>
    %42 = vector.broadcast %40 : vector<1x128xi32> to vector<256x128xi32>
    %43 = arith.cmpi eq, %41, %42 : vector<256x128xi32>
    %44 = arith.extui %43 : vector<256x128xi1> to vector<256x128xi32>
    %45 = arith.sitofp %44 : vector<256x128xi32> to vector<256x128xf32>
    %46 = arith.truncf %45 : vector<256x128xf32> to vector<256x128xbf16>
    %c0_16 = arith.constant 0 : index
    %c0_17 = arith.constant 0 : index
    %47 = vector.load %arg7[%c0_16, %c0_17] : memref<65x256xf32, #tpu.memory_space<vmem>>, vector<65x256xf32>
    %c0_18 = arith.constant 0 : index
    %c0_19 = arith.constant 0 : index
    %c0_20 = arith.constant 0 : index
    %48 = vector.load %arg4[%c0_18, %c0_19, %c0_20] : memref<1x65x128xbf16, #tpu.memory_space<vmem>>, vector<1x65x128xbf16>
    %49 = vector.shape_cast %48 : vector<1x65x128xbf16> to vector<65x128xbf16>
    %cst_21 = arith.constant dense<0.000000e+00> : vector<65x256xf32>
    %50 = tpu.matmul %49, %46, %cst_21 {dimension_numbers = #tpu.dot_dimension_numbers<[1], [1], [0], [0], [0, 0, 1, 0], [], []>} : vector<65x128xbf16>, vector<256x128xbf16>, vector<65x256xf32> -> vector<65x256xf32>
    %51 = arith.addf %47, %50 : vector<65x256xf32>
    %c0_22 = arith.constant 0 : index
    %c0_23 = arith.constant 0 : index
    %52 = vector.load %arg7[%c0_22, %c0_23] : memref<65x256xf32, #tpu.memory_space<vmem>>, vector<65x256xf32>
    tpu.vector_store %arg7[%c0_22, %c0_23], %51 {strides = array<i32>} : memref<65x256xf32, #tpu.memory_space<vmem>>, vector<65x256xf32>,
    %c0_i32_24 = arith.constant 0 : i32
    %53 = arith.cmpi eq, %arg2, %c0_i32_24 : i32
    %54 = arith.extui %53 : i1 to i32
    %c0_i32_25 = arith.constant 0 : i32
    %55 = arith.cmpi ne, %54, %c0_i32_25 : i32
    scf.if %55 {
      %c0_26 = arith.constant 0 : index
      %c0_27 = arith.constant 0 : index
      %56 = vector.load %arg7[%c0_26, %c0_27] : memref<65x256xf32, #tpu.memory_space<vmem>>, vector<65x256xf32>
      %57 = vector.extract_strided_slice %56 {offsets = [0, 0], sizes = [32, 256], strides = [1, 1]} : vector<65x256xf32> to vector<32x256xf32>
      %58 = vector.extract_strided_slice %56 {offsets = [32, 0], sizes = [32, 256], strides = [1, 1]} : vector<65x256xf32> to vector<32x256xf32>
      %59 = arith.addf %57, %58 : vector<32x256xf32>
      %60 = vector.extract_strided_slice %56 {offsets = [64, 0], sizes = [1, 256], strides = [1, 1]} : vector<65x256xf32> to vector<1x256xf32>
      %cst_28 = arith.constant 5.000000e-01 : f32
      %61 = vector.broadcast %cst_28 : f32 to vector<1x256xf32>
      %62 = arith.cmpf ogt, %60, %61 : vector<1x256xf32>
      %cst_29 = arith.constant 1.000000e+00 : f32
      %63 = vector.broadcast %cst_29 : f32 to vector<1x256xf32>
      %64 = arith.maximumf %60, %63 : vector<1x256xf32>
      %cst_30 = arith.constant 1.000000e+00 : f32
      %65 = vector.broadcast %cst_30 : f32 to vector<1x256xf32>
      %66 = arith.divf %65, %64 : vector<1x256xf32>
      %cst_31 = arith.constant 0.000000e+00 : f32
      %67 = vector.broadcast %cst_31 : f32 to vector<1x256xf32>
      %68 = arith.select %62, %66, %67 : vector<1x256xi1>, vector<1x256xf32>
      %c0_32 = arith.constant 0 : index
      %c0_33 = arith.constant 0 : index
      %69 = vector.load %arg5[%c0_32, %c0_33] : memref<32x256xf32, #tpu.memory_space<vmem>>, vector<32x256xf32>
      %70 = vector.broadcast %68 : vector<1x256xf32> to vector<32x256xf32>
      %71 = arith.mulf %59, %70 : vector<32x256xf32>
      %72 = arith.addf %69, %71 : vector<32x256xf32>
      %c0_34 = arith.constant 0 : index
      %c0_35 = arith.constant 0 : index
      %c0_36 = arith.constant 0 : index
      %73 = vector.load %arg6[%c0_34, %c0_35, %c0_36] : memref<1x32x256xf32, #tpu.memory_space<vmem>>, vector<1x32x256xf32>
      %74 = vector.shape_cast %73 : vector<1x32x256xf32> to vector<32x256xf32>
      %75 = vector.shape_cast %72 : vector<32x256xf32> to vector<1x32x256xf32>
      tpu.vector_store %arg6[%c0_34, %c0_35, %c0_36], %75 {strides = array<i32>} : memref<1x32x256xf32, #tpu.memory_space<vmem>>, vector<1x32x256xf32>,
    } else {
    }
    return
  }
  func.func @transform_0(%arg0: i32, %arg1: i32, %arg2: i32) -> (i32, i32, i32) {
    %c0_i32 = arith.constant 0 : i32
    %c0_i32_0 = arith.constant 0 : i32
    return %arg0, %c0_i32, %arg2 : i32, i32, i32
  }
  func.func @transform_1(%arg0: i32, %arg1: i32, %arg2: i32) -> (i32, i32, i32) {
    %c0_i32 = arith.constant 0 : i32
    %c0_i32_0 = arith.constant 0 : i32
    return %arg0, %c0_i32, %arg2 : i32, i32, i32
  }
  func.func @transform_2(%arg0: i32, %arg1: i32, %arg2: i32) -> (i32, i32) {
    %c0_i32 = arith.constant 0 : i32
    %c0_i32_0 = arith.constant 0 : i32
    return %c0_i32, %arg1 : i32, i32
  }
  func.func @transform_3(%arg0: i32, %arg1: i32, %arg2: i32) -> (i32, i32, i32) {
    %c0_i32 = arith.constant 0 : i32
    %c0_i32_0 = arith.constant 0 : i32
    return %arg0, %c0_i32, %arg1 : i32, i32, i32
  }
}

</mosaic_0001>

<bundles_post_ra>
// kernel: tpu_custom_call.1
= control target key start
LH: loop header
LB: loop body
LE: loop exit
PB: predicated region body
PF: predicated region fallthrough
CT: control target
= control target key end

     0   :  { %8 = vsyncpa [#allocation4], 0  ;;  %s1394_s0 = inlined_call_operand.vmem [shape: f32[2,2,128], index: 0, kind: input, shape index: {}]   ;;  %s1395_s1 = inlined_call_operand.vmem [shape: bf16[2,65,128], index: 1, kind: input, shape index: {}]   ;;  %s1396_s2 = inlined_call_operand.vmem [shape: f32[32,256], index: 2, kind: input, shape index: {}]   ;;  %s1397_s3 = inlined_call_operand.hbm [shape: f32[2,32,256], index: 3, kind: output, shape index: {}]  }
   0x1   :  { %10 = vsyncpa [#allocation4 + $0x1], 0  ;;  %s1127_s12 = smov 0   ;;  %s1129_s13 = smov 0  }
   0x2   :  { %s1131_s14 = smov 0   ;;  %s1133_s15 = smov 0  }
   0x3   :  { %s1135_s16 = smov 0   ;;  %s1137_s17 = smov 0  }
   0x4 LB: > { %s834_s18 = sadd.s32 4294967295, %s1100_s17   ;;  %s835_s19 = sadd.s32 4294967294, %s1100_s17   ;;  %s1100_s17 = sphi %s1137_s17, %s16_s17   ;;  %s1096_s16 = sphi %s1135_s16, %s1404_s16   ;;  %s1092_s15 = sphi %s1133_s15, %s1403_s15   ;;  %s1088_s14 = sphi %s1131_s14, %s1402_s14   ;;  %s1084_s13 = sphi %s1129_s13, %s1401_s13   ;;  %s1080_s12 = sphi %s1127_s12, %s1400_s12  }
   0x5   : > { %s35_s20 = sadd.s32 1, %s1096_s16  ;;  %s126_s21 = sadd.s32 1, %s1088_s14 }
   0x6   : > { %p37_p0 = scmp.ge.s32.totalorder %s35_s20, 2  ;;  %p136_p1 = scmp.ne.s32.totalorder %s1088_s14, %s1084_s13 }
   0x7   : > { %p137_p2 = scmp.eq.s32.totalorder %s834_s18, 1  ;;  %p142_p3 = scmp.ne.s32.totalorder %s1084_s13, %s1080_s12 }
   0x8   : > { %s1406_s20 = smov (%p37_p0, %s35_s20), 0  ;;  %p143_p5 = scmp.eq.s32.totalorder %s835_s19, 1 }
   0x9   : > { %p1167_p4 = por %p137_p2, %p136_p1  ;;  %s121_s23 = ssub.s32 %s1096_s16, %s1406_s20 }
   0xa   : > { %p839_p6 = scmp.ge.s32.totalorder %s1100_s17, 1  ;;  %p124_p7 = scmp.eq.s32.totalorder %s121_s23, 0 }
   0xb   : > { %p1174_p8 = por %p143_p5, %p142_p3  ;;  %p191_p9 = scmp.lt.s32.totalorder %s1100_s17, 3 }
   0xc   : > { %s1180_s25 = scalar_select %p124_p7, %s1088_s14, %s126_s21  }
   0xd   : > { %p192_p10 = pnand %p839_p6, %p191_p9 }
   0xe   : > { %p230_p11 = scmp.lt.s32.totalorder (!%p192_p10), %s1092_s15, 1  ;;  %s227_s8 = sand.u32 (!%p192_p10), 1, %s1084_s13  }
   0xf   : > { %195 = sbr.rel (%p192_p10) target bundleno = 325 (0x145), region = 32  ;;  %s840_s9 = sshll.u32 (!%p192_p10), %s227_s8, 6 }
  0x10   : > { %s1325_s28 = scalar_lea.vmem (!%p192_p10), [#allocation3], %s840_s9  ;;  %s934_s29 = sshll.u32 (!%p192_p10), %s1092_s15, 6 }
  0x11   : > { %s719_s21 = sshll.u32 (!%p192_p10), %s1325_s28, 4  ;;  %s720_s21 = int_to_ptr.vmem [resolvable:$true] %s719_s21 }
  0x14   : > { %v1102_v0 = vmov 0.13333334   ;;  %s1184_s26 = scalar_select %p230_p11, %s1092_s15, 1  ;;  %v302_v17 = vlaneseq  ;;  %v1103_v36 = vmov 1.0|1.0   ;;  %v1104_v63 = vmov 0.0  }
  0x15   : > { %1016 = vrcp.f32 %v1102_v0  ;;  %272 = vst [vmem:[#allocation2 + $0x68] sm:$0x1] %v1104_v63  ;;  %s718_s15 = scalar_lea.hbm %s1397_s3, %s934_s29 }
  0x16   : > { %s841_s27 = sshll.u32 %s1184_s26, 1  ;;  %v1190_v22 = vshrl.u32 %v302_v17, 7  ;;  %s951_s4 = smul.u32 36, %s1184_s26  ;;  %273 = vst [vmem:[#allocation2 + $0x60] sm:$0x1] %v1104_v63 }
  0x17   : > { %s236_s30 = scalar_lea.vmem %s1394_s0, %s841_s27  ;;  %s721_s23 = sshll.u32 %s718_s15, 4  ;;  %s722_s23 = int_to_ptr.hbm [resolvable:$true] %s721_s23 }
  0x18   : > { %v274_v1 = vld [vmem:[%s236_s30] sm:$0x1]  ;;  %v289_v2 = vld [vmem:[%s236_s30 + $0x1] sm:$0x1]  ;;  %v317_v26 = vadd.s32 112, %v1190_v22  ;;  %v318_v28 = vadd.s32 120, %v1190_v22  ;;  %s244_s7 = scalar_lea.vmem %s1395_s1, %s951_s4 }
  0x19   : > { %v843_v5 = vadd.f32 1.0, %v274_v1  ;;  %v844_v6 = vadd.f32 1.0, %v289_v2  ;;  %v333_v29 = vadd.s32 240, %v1190_v22  ;;  %v334_v30 = vadd.s32 248, %v1190_v22  ;;  %v932_v60 = vld [vmem:[%s244_s7 + $0x10] sm:$0xff]  ;;  %v930_v61 = vld [vmem:[%s244_s7] sm:$0xff] }
  0x1a   : > { %v315_v32 = vadd.s32 96, %v1190_v22  ;;  %v316_v33 = vadd.s32 104, %v1190_v22  ;;  %v331_v34 = vadd.s32 224, %v1190_v22  ;;  %v332_v35 = vadd.s32 232, %v1190_v22  ;;  %v933_v62 = vld [vmem:[%s244_s7 + $0x18] sm:$0xff]  ;;  %v931_v2 = vld [vmem:[%s244_s7 + $0x8] sm:$0xff] }
  0x1b   : > { %v1017_v3 = vpop.eup %1016  ;;  %v276_v9 = vadd.f32 0.06666667, %v843_v5  ;;  %v291_v10 = vadd.f32 0.06666667, %v844_v6  ;;  %v313_v37 = vadd.s32 80, %v1190_v22  ;;  %v314_v38 = vadd.s32 88, %v1190_v22 }
  0x1c   : > { %v278_v4 = vmul.f32 0.13333334, %v1017_v3  ;;  %vm282_vm0 = vweird.f32 %v1017_v3  ;;  %v329_v39 = vadd.s32 208, %v1190_v22  ;;  %v330_v40 = vadd.s32 216, %v1190_v22  ;;  %v474_v0 = vld [vmem:[%s244_s7 + $0x20] sm:$0x1] }
  0x1d   : > { %v311_v41 = vadd.s32 64, %v1190_v22  ;;  %v312_v42 = vadd.s32 72, %v1190_v22  ;;  %v327_v43 = vadd.s32 192, %v1190_v22  ;;  %v328_v44 = vadd.s32 200, %v1190_v22  ;;  %s705_s26 = scalar_lea.sflag [#allocation4], %s227_s8  ;;  %s1036_s27 = sshra.s32 %s722_s23, 4  ;;  %s1037_s27 = int_to_ptr.hbm [resolvable:$true] %s1036_s27 }
  0x1e   : > { %v279_v7 = vsub.f32 1.0, %v278_v4  ;;  %v309_v45 = vadd.s32 48, %v1190_v22  ;;  %v310_v46 = vadd.s32 56, %v1190_v22  ;;  %v325_v47 = vadd.s32 176, %v1190_v22  ;;  %s1038_s29 = scalar_lea.hbm %s1037_s27, 64  ;;  %s1042_s15 = scalar_lea.hbm %s1397_s3, 128 }
  0x1f   : > { %v326_v48 = vadd.s32 184, %v1190_v22  ;;  %v307_v49 = vadd.s32 32, %v1190_v22  ;;  %v308_v50 = vadd.s32 40, %v1190_v22  ;;  %v323_v51 = vadd.s32 160, %v1190_v22  ;;  %p1039_p12 = scmp.ne.s32.totalorder %s1037_s27, %s1038_s29  ;;  %p1043_p1 = scmp.lt.s32.totalorder %s1037_s27, %s1397_s3 }
  0x20   : > { %v280_v8 = vmul.f32 %v1017_v3, %v279_v7  ;;  %v324_v52 = vadd.s32 168, %v1190_v22  ;;  %v305_v53 = vadd.s32 16, %v1190_v22  ;;  %v306_v54 = vadd.s32 24, %v1190_v22  ;;  %p1044_p2 = scmp.lt.s32.totalorder %s1042_s15, %s1038_s29 }
  0x21   : > { %v321_v55 = vadd.s32 144, %v1190_v22  ;;  %v322_v56 = vadd.s32 152, %v1190_v22  ;;  %v304_v57 = vadd.s32 8, %v1190_v22  ;;  %v319_v58 = vadd.s32 128, %v1190_v22  ;;  %p1040_p13 = pnand %p1039_p12, %p1167_p4 }
  0x22   : > { %v281_v11 = vadd.f32 %v1017_v3, %v280_v8  ;;  %v320_v59 = vadd.s32 136, %v1190_v22  ;;  %v492_v1 = vunpack.c.l.b16 %v474_v0  ;;  %p1045_p3 = por %p1044_p2, %p1043_p1 }
  0x23   : > { %p1041_p0 = pneg %p1040_p13 }
  0x24   : > { %v283_v12 = vsel %vm282_vm0, %v1017_v3, %v281_v11  ;;  %v497_v3 = vpack.c.b16 %v492_v1, %v492_v1 }
  0x25   : > { %v284_v13 = vmul.f32 %v283_v12, %v276_v9  ;;  %v292_v14 = vmul.f32 %v291_v10, %v283_v12  ;;  %p1046_p5 = pnand %p1045_p3, %p1041_p0 }
  0x27   : > { %v285_v15 = vfloor.f32 %v284_v13  ;;  %v293_v16 = vfloor.f32 %v292_v14  ;;  %v465_v14 = vld [vmem:[#allocation2 + $0x60] sm:$0x1] }
  0x29   : > { %v286_v18 = vmax.f32 %v285_v15, 0.0  ;;  %v294_v19 = vmax.f32 %v293_v16, 0.0 }
  0x2b   : > { %v287_v20 = vmin.f32 %v286_v18, 15.0  ;;  %v295_v21 = vmin.f32 %v294_v19, 15.0 }
  0x2d   : > { %v953_v23 = vcvt.f32.s32 %v287_v20  ;;  %v955_v24 = vcvt.f32.s32 %v295_v21 }
  0x2f   : > { %v297_v25 = vmul.u32 16, %v953_v23 }
  0x31   : > { %v298_v27 = vadd.s32 %v955_v24, %v297_v25  ;;  %v464_v25 = vld [vmem:[#allocation2 + $0x68] sm:$0x1] }
  0x33   : > { %v1196_v31 = vperm.slane %v298_v27, 0 }
  0x35   : > { %vm350_vm1 = vcmp.eq.s32.totalorder %v317_v26, %v1196_v31  ;;  %vm351_vm2 = vcmp.eq.s32.totalorder %v318_v28, %v1196_v31  ;;  %vm366_vm3 = vcmp.eq.s32.totalorder %v333_v29, %v1196_v31  ;;  %vm367_vm4 = vcmp.eq.s32.totalorder %v334_v30, %v1196_v31 }
  0x36   : > { %vm893_vm5 = vmpackc.low %vm351_vm2, %vm350_vm1  ;;  %vm348_vm7 = vcmp.eq.s32.totalorder %v315_v32, %v1196_v31  ;;  %vm349_vm8 = vcmp.eq.s32.totalorder %v316_v33, %v1196_v31  ;;  %vm364_vm9 = vcmp.eq.s32.totalorder %v331_v34, %v1196_v31  ;;  %vm365_vm10 = vcmp.eq.s32.totalorder %v332_v35, %v1196_v31 }
  0x37   : > { %935 = vmatpush.bf16.xpose.msk.msra.mxu2 %vm893_vm5, %v1103_v36  ;;  %vm909_vm6 = vmpackc.low %vm367_vm4, %vm366_vm3  ;;  %894 = vmatpush.bf16.xpose.msk.msra.mxu0 %vm893_vm5, %v1103_v36  ;;  %vm346_vm13 = vcmp.eq.s32.totalorder %v313_v37, %v1196_v31  ;;  %vm347_vm14 = vcmp.eq.s32.totalorder %v314_v38, %v1196_v31  ;;  %vm362_vm15 = vcmp.eq.s32.totalorder %v329_v39, %v1196_v31 }
  0x38   : > { %910 = vmatpush.bf16.xpose.msk.msra.mxu1 %vm909_vm6, %v1103_v36  ;;  %943 = vmatpush.bf16.xpose.msk.msra.mxu3 %vm909_vm6, %v1103_v36  ;;  %vm895_vm11 = vmpackc.low %vm349_vm8, %vm348_vm7  ;;  %vm363_vm0 = vcmp.eq.s32.totalorder %v330_v40, %v1196_v31  ;;  %vm344_vm3 = vcmp.eq.s32.totalorder %v311_v41, %v1196_v31  ;;  %vm345_vm4 = vcmp.eq.s32.totalorder %v312_v42, %v1196_v31 }
  0x39   : > { %vm911_vm12 = vmpackc.low %vm365_vm10, %vm364_vm9  ;;  %vm360_vm5 = vcmp.eq.s32.totalorder %v327_v43, %v1196_v31  ;;  %vm361_vm6 = vcmp.eq.s32.totalorder %v328_v44, %v1196_v31  ;;  %vm342_vm9 = vcmp.eq.s32.totalorder %v309_v45, %v1196_v31  ;;  %vm343_vm10 = vcmp.eq.s32.totalorder %v310_v46, %v1196_v31 }
  0x3a   : > { %vm897_vm1 = vmpackc.low %vm347_vm14, %vm346_vm13 }
  0x3b   : > { %vm913_vm2 = vmpackc.low %vm363_vm0, %vm362_vm15  ;;  %vm340_vm15 = vcmp.eq.s32.totalorder %v307_v49, %v1196_v31  ;;  %vm341_vm0 = vcmp.eq.s32.totalorder %v308_v50, %v1196_v31  ;;  %v677_v49 = vld [vmem:[%s1396_s2 + $0x38] sm:$0xff] }
  0x3c   : > { %vm899_vm7 = vmpackc.low %vm345_vm4, %vm344_vm3 }
  0x3d   : > { %vm915_vm8 = vmpackc.low %vm361_vm6, %vm360_vm5  ;;  %vm338_vm5 = vcmp.eq.s32.totalorder %v305_v53, %v1196_v31  ;;  %vm339_vm6 = vcmp.eq.s32.totalorder %v306_v54, %v1196_v31  ;;  %v675_v54 = vld [vmem:[%s1396_s2 + $0x28] sm:$0xff] }
  0x3e   : > { %vm901_vm13 = vmpackc.low %vm343_vm10, %vm342_vm9 }
  0x3f   : > { %936 = vmatpush.bf16.xpose.msk.msra.mxu2 %vm895_vm11, %v1103_v36  ;;  %896 = vmatpush.bf16.xpose.msk.msra.mxu0 %vm895_vm11, %v1103_v36  ;;  %vm358_vm11 = vcmp.eq.s32.totalorder %v325_v47, %v1196_v31  ;;  %vm903_vm3 = vmpackc.low %vm341_vm0, %vm340_vm15 }
  0x40   : > { %912 = vmatpush.bf16.xpose.msk.msra.mxu1 %vm911_vm12, %v1103_v36  ;;  %944 = vmatpush.bf16.xpose.msk.msra.mxu3 %vm911_vm12, %v1103_v36  ;;  %vm359_vm12 = vcmp.eq.s32.totalorder %v326_v48, %v1196_v31  ;;  %vm905_vm9 = vmpackc.low %vm339_vm6, %vm338_vm5  ;;  %v671_v48 = vld [vmem:[%s1396_s2 + $0x8] sm:$0xff] }
  0x41   : > { %vm917_vm14 = vmpackc.low %vm359_vm12, %vm358_vm11  ;;  %vm336_vm11 = vcmp.eq.s32.totalorder %v1190_v22, %v1196_v31  ;;  %vm337_vm12 = vcmp.eq.s32.totalorder %v304_v57, %v1196_v31 }
  0x42   : > { %vm907_vm15 = vmpackc.low %vm337_vm12, %vm336_vm11 }
  0x47   : > { %937 = vmatpush.bf16.xpose.msk.msra.mxu2 %vm897_vm1, %v1103_v36  ;;  %898 = vmatpush.bf16.xpose.msk.msra.mxu0 %vm897_vm1, %v1103_v36  ;;  %vm356_vm1 = vcmp.eq.s32.totalorder %v323_v51, %v1196_v31 }
  0x48   : > { %914 = vmatpush.bf16.xpose.msk.msra.mxu1 %vm913_vm2, %v1103_v36  ;;  %945 = vmatpush.bf16.xpose.msk.msra.mxu3 %vm913_vm2, %v1103_v36  ;;  %vm357_vm2 = vcmp.eq.s32.totalorder %v324_v52, %v1196_v31  ;;  %v673_v52 = vld [vmem:[%s1396_s2 + $0x18] sm:$0xff] }
  0x49   : > { %vm919_vm4 = vmpackc.low %vm357_vm2, %vm356_vm1 }
  0x4f   : > { %938 = vmatpush.bf16.xpose.msk.msra.mxu2 %vm899_vm7, %v1103_v36  ;;  %900 = vmatpush.bf16.xpose.msk.msra.mxu0 %vm899_vm7, %v1103_v36  ;;  %vm354_vm7 = vcmp.eq.s32.totalorder %v321_v55, %v1196_v31 }
  0x50   : > { %916 = vmatpush.bf16.xpose.msk.msra.mxu1 %vm915_vm8, %v1103_v36  ;;  %946 = vmatpush.bf16.xpose.msk.msra.mxu3 %vm915_vm8, %v1103_v36  ;;  %vm355_vm8 = vcmp.eq.s32.totalorder %v322_v56, %v1196_v31 }
  0x51   : > { %vm921_vm10 = vmpackc.low %vm355_vm8, %vm354_vm7 }
  0x57   : > { %939 = vmatpush.bf16.xpose.msk.msra.mxu2 %vm901_vm13, %v1103_v36  ;;  %902 = vmatpush.bf16.xpose.msk.msra.mxu0 %vm901_vm13, %v1103_v36  ;;  %vm352_vm13 = vcmp.eq.s32.totalorder %v319_v58, %v1196_v31 }
  0x58   : > { %918 = vmatpush.bf16.xpose.msk.msra.mxu1 %vm917_vm14, %v1103_v36  ;;  %947 = vmatpush.bf16.xpose.msk.msra.mxu3 %vm917_vm14, %v1103_v36  ;;  %vm353_vm14 = vcmp.eq.s32.totalorder %v320_v59, %v1196_v31 }
  0x59   : > { %vm923_vm0 = vmpackc.low %vm353_vm14, %vm352_vm13 }
  0x5f   : > { %940 = vmatpush.bf16.xpose.msk.msra.mxu2 %vm903_vm3, %v1103_v36  ;;  %904 = vmatpush.bf16.xpose.msk.msra.mxu0 %vm903_vm3, %v1103_v36 }
  0x60   : > { %920 = vmatpush.bf16.xpose.msk.msra.mxu1 %vm919_vm4, %v1103_v36  ;;  %948 = vmatpush.bf16.xpose.msk.msra.mxu3 %vm919_vm4, %v1103_v36 }
  0x67   : > { %941 = vmatpush.bf16.xpose.msk.msra.mxu2 %vm905_vm9, %v1103_v36  ;;  %906 = vmatpush.bf16.xpose.msk.msra.mxu0 %vm905_vm9, %v1103_v36 }
  0x68   : > { %922 = vmatpush.bf16.xpose.msk.msra.mxu1 %vm921_vm10, %v1103_v36  ;;  %949 = vmatpush.bf16.xpose.msk.msra.mxu3 %vm921_vm10, %v1103_v36 }
  0x6f   : > { %942 = vmatpush.bf16.xpose.msk.msra.mxu2 %vm907_vm15, %v1103_v36  ;;  %908 = vmatpush.bf16.xpose.msk.msra.mxu0 %vm907_vm15, %v1103_v36 }
  0x70   : > { %924 = vmatpush.bf16.xpose.msk.msra.mxu1 %vm923_vm0, %v1103_v36  ;;  %950 = vmatpush.bf16.xpose.msk.msra.mxu3 %vm923_vm0, %v1103_v36 }
  0x76   : > { %521 = vmatmul.bf16.vlgmr.msra.gmra.mxu2 %v932_v60  ;;  %511 = vmatmul.bf16.vlgmr.msra.gmra.mxu0 %v930_v61 }
  0x77   : > { %544 = vmatmul.bf16.vlgmr.msra.gmra.mxu1 %v930_v61  ;;  %559 = vmatmul.bf16.vlgmr.msra.gmra.mxu3 %v933_v62 }
  0x86   : > { %526 = vmatmul.bf16.gmra.mxu2 %v933_v62  ;;  %516 = vmatmul.bf16.gmra.mxu0 %v931_v2 }
  0x87   : > { %549 = vmatmul.bf16.gmra.mxu1 %v931_v2  ;;  %564 = vmatmul.bf16.gmra.mxu3 %v497_v3 }
  0x96   : > { %531 = vmatmul.bf16.gmra.mxu2 %v497_v3 }
  0x97   : > { %554 = vmatmul.bf16.gmra.mxu1 %v932_v60 }
  0xf3   : > { %v1294_v4 = vpop.f32.mrf.mxu0 }
  0xf4   : > { %v545_v5 = vpop.f32.mrf.mxu1 }
  0xf9   : > { %v1296_v6 = vpop.f32.mrf.mxu2 }
  0xfa   : > { %v560_v7 = vpop.f32.mrf.mxu3 }
  0xfb   : > { %v1298_v8 = vpop.f32.mrf.mxu0 }
  0xfc   : > { %v547_v9 = vpop.f32.mrf.mxu1 }
 0x101   : > { %v1300_v10 = vpop.f32.mrf.mxu2 }
 0x102   : > { %v562_v11 = vpop.f32.mrf.mxu3 }
 0x103   : > { %v1302_v12 = vpop.f32.mrf.mxu0 }
 0x104   : > { %v550_v13 = vpop.f32.mrf.mxu1 }
 0x105   : > { %v631_v42 = vadd.f32 %v560_v7, %v550_v13  ;;  %v628_v13 = vadd.f32 %v1300_v10, %v1298_v8  ;;  %v674_v8 = vld [vmem:[%s1396_s2 + $0x20] sm:$0xff]  ;;  %v676_v10 = vld [vmem:[%s1396_s2 + $0x30] sm:$0xff] }
 0x109   : > { %v1304_v15 = vpop.f32.mrf.mxu2 }
 0x10a   : > { %v565_v16 = vpop.f32.mrf.mxu3 }
 0x10b   : > { %v586_v17 = vadd.f32 %v565_v16, %v465_v14  ;;  %v1306_v18 = vpop.f32.mrf.mxu0  ;;  %v630_v14 = vadd.f32 %v1304_v15, %v1302_v12 }
 0x10c   : > { %v552_v19 = vpop.f32.mrf.mxu1 }
 0x10d   : > { %604 = vst [vmem:[#allocation2 + $0x60] sm:$0x1] %v586_v17  ;;  %v633_v45 = vadd.f32 %v562_v11, %v552_v19 }
 0x111   : > { %v1308_v20 = vpop.f32.mrf.mxu2 }
 0x112   : > { %v567_v21 = vpop.f32.mrf.mxu3  ;;  %v632_v16 = vadd.f32 %v1308_v20, %v1306_v18 }
 0x114   : > { %v625_v22 = vld [vmem:[#allocation2 + $0x60] sm:$0x1]  ;;  %v555_v23 = vpop.f32.mrf.mxu1 }
 0x115   : > { %v637_v24 = vmax.f32 %v625_v22, 1.0  ;;  %vm635_vm5 = vcmp.gt.f32.partialorder %v625_v22, 0.5  ;;  %v627_v46 = vadd.f32 %v555_v23, %v545_v5 }
 0x117   : > { %1018 = vrcp.f32 %v637_v24  ;;  %v664_v31 = vand.u32 2147483648, %v637_v24  ;;  %vm658_vm1 = vweird.f32 %v637_v24  ;;  %v662_v33 = vand.u32 2147483647, %v637_v24 }
 0x119   : > { %v532_v26 = vpop.f32.mrf.mxu2  ;;  %v665_v36 = vor.u32 1.1754944e-38, %v664_v31  ;;  %vm663_vm4 = vcmp.eq.f32.partialorder %v662_v33, 8.507059e+37 }
 0x11a   : > { %v585_v27 = vadd.f32 %v532_v26, %v464_v25 }
 0x11c   : > { %603 = vst [vmem:[#allocation2 + $0x68] sm:$0x1] %v585_v27  ;;  %v557_v28 = vpop.f32.mrf.mxu1 }
 0x11d   : > { %v1019_v29 = vpop.eup %1018  ;;  %v629_v47 = vadd.f32 %v557_v28, %v547_v9  ;;  %v626_v9 = vadd.f32 %v1296_v6, %v1294_v4  ;;  %v670_v4 = vld [vmem:[%s1396_s2] sm:$0xff]  ;;  %v672_v6 = vld [vmem:[%s1396_s2 + $0x10] sm:$0xff] }
 0x11e   : > { %v654_v30 = vmul.f32 %v1019_v29, %v637_v24  ;;  %vm659_vm2 = vweird.f32 %v1019_v29 }
 0x11f   : > { %vm660_vm3 = vmor %vm658_vm1, %vm659_vm2 }
 0x120   : > { %v655_v32 = vsub.f32 1.0, %v654_v30 }
 0x121   : > { %v534_v34 = vpop.f32.mrf.mxu2 }
 0x122   : > { %v656_v35 = vmul.f32 %v1019_v29, %v655_v32 }
 0x123   : > { %v624_v37 = vld [vmem:[#allocation2 + $0x68] sm:$0x1] }
 0x124   : > { %v657_v38 = vadd.f32 %v1019_v29, %v656_v35  ;;  %v636_v39 = vmax.f32 %v624_v37, 1.0  ;;  %vm634_vm10 = vcmp.gt.f32.partialorder %v624_v37, 0.5 }
 0x126   : > { %v661_v40 = vsel %vm660_vm3, %v1019_v29, %v657_v38  ;;  %1020 = vrcp.f32 %v636_v39  ;;  %v649_v63 = vand.u32 2147483648, %v636_v39  ;;  %v647_v1 = vand.u32 2147483647, %v636_v39 }
 0x127   : > { %v666_v41 = vsel %vm663_vm4, %v665_v36, %v661_v40  ;;  %vm643_vm7 = vweird.f32 %v636_v39 }
 0x128   : > { %v669_v43 = vsel %vm635_vm5, %v666_v41, 0.0  ;;  %v650_v3 = vor.u32 1.1754944e-38, %v649_v63  ;;  %vm648_vm9 = vcmp.eq.f32.partialorder %v647_v1, 8.507059e+37 }
 0x129   : > { %v679_v44 = vperm.slane %v669_v43, 0 }
 0x12b   : > { %v687_v50 = vmul.f32 %v679_v44, %v633_v45  ;;  %v681_v51 = vmul.f32 %v679_v44, %v627_v46  ;;  %v683_v53 = vmul.f32 %v679_v44, %v629_v47  ;;  %v685_v55 = vmul.f32 %v679_v44, %v631_v42 }
 0x12c   : > { %v1021_v56 = vpop.eup %1020 }
 0x12d   : > { %v689_v57 = vadd.f32 %v681_v51, %v671_v48  ;;  %v639_v58 = vmul.f32 %v1021_v56, %v636_v39  ;;  %v695_v59 = vadd.f32 %v687_v50, %v677_v49  ;;  %v691_v60 = vadd.f32 %v683_v53, %v673_v52 }
 0x12e   : > { %v693_v61 = vadd.f32 %v685_v55, %v675_v54  ;;  %vm644_vm6 = vweird.f32 %v1021_v56 }
 0x12f   : > { %v640_v62 = vsub.f32 1.0, %v639_v58  ;;  %697 = vst [vmem:[%s1325_s28 + $0x8] sm:$0xff] %v689_v57  ;;  %vm645_vm8 = vmor %vm643_vm7, %vm644_vm6 }
 0x130   : > { %699 = vst [vmem:[%s1325_s28 + $0x18] sm:$0xff] %v691_v60 }
 0x131   : > { %v641_v0 = vmul.f32 %v1021_v56, %v640_v62  ;;  %701 = vst [vmem:[%s1325_s28 + $0x28] sm:$0xff] %v693_v61 }
 0x132   : > { %703 = vst [vmem:[%s1325_s28 + $0x38] sm:$0xff] %v695_v59 }
 0x133   : > { %v642_v2 = vadd.f32 %v1021_v56, %v641_v0 }
 0x135   : > { %v646_v5 = vsel %vm645_vm8, %v1021_v56, %v642_v2 }
 0x136   : > { %v651_v7 = vsel %vm648_vm9, %v650_v3, %v646_v5 }
 0x137   : > { %v668_v11 = vsel %vm634_vm10, %v651_v7, 0.0 }
 0x138   : > { %v678_v17 = vperm.slane %v668_v11, 0 }
 0x13a   : > { %v680_v12 = vmul.f32 %v678_v17, %v626_v9  ;;  %v682_v15 = vmul.f32 %v678_v17, %v628_v13  ;;  %v684_v18 = vmul.f32 %v678_v17, %v630_v14  ;;  %v686_v19 = vmul.f32 %v678_v17, %v632_v16 }
 0x13c   : > { %v688_v20 = vadd.f32 %v680_v12, %v670_v4  ;;  %v690_v21 = vadd.f32 %v682_v15, %v672_v6  ;;  %v692_v22 = vadd.f32 %v684_v18, %v674_v8  ;;  %v694_v23 = vadd.f32 %v686_v19, %v676_v10 }
 0x13e   : > { %696 = vst [vmem:[%s1325_s28] sm:$0xff] %v688_v20 }
 0x13f   : > { %698 = vst [vmem:[%s1325_s28 + $0x10] sm:$0xff] %v690_v21 }
 0x140   : > { %700 = vst [vmem:[%s1325_s28 + $0x20] sm:$0xff] %v692_v22 }
 0x141   : > { %702 = vst [vmem:[%s1325_s28 + $0x30] sm:$0xff] %v694_v23 }
 0x142   : > { %1049 = shalt.err (!%p1046_p5)
}
 0x143   : > { %s1105_s8 = smov 256   ;;  %s1106_s28 = smov 16  }
 0x144   : > { %956 = dma.vmem_to_hbm [thread:$0]  (%p1167_p4), %s720_s21, 1024, %s722_s23, %s705_s26, %s1105_s8, %s1105_s8, %s1106_s28  }
 0x145 PF: > { %p962_p6 = scmp.ge.s32.totalorder %s1100_s17, 2  ;;  %s736_s7 = sand.u32 1, %s1080_s12  }
 0x146   : > { %s737_s9 = scalar_lea.sflag [#allocation4], %s736_s7 }
 0x147   : > { %p959_p7 = pnand %p962_p6, %p1174_p8 }
 0x149   : > { %p960_p9 = pneg %p959_p7 }
 0x14b   : > { %1075 = dma.done.wait (%p960_p9), %s737_s9, 1024  }
 0x14c   : > { %1077 = vsyncadd (%p960_p9), %s737_s9, 4294966272  ;;  %s16_s17 = sadd.s32 1, %s1100_s17   ;;  %s1400_s12 = smov %s1084_s13 }
 0x14d   : > { %p13_p10 = scmp.ge.s32.totalorder %s16_s17, 4   ;;  %s1401_s13 = smov %s1088_s14 }
 0x14e   : > { %s1402_s14 = smov %s1180_s25  ;;  %s1403_s15 = smov %s1096_s16 }
 0x14f   : > { %s1404_s16 = smov %s1406_s20  ;;  %15 = sbr.rel (!%p13_p10) target bundleno = 4 (0x4), region = 81 }
 0x154   :  { %743 = vsyncpa [#allocation4], 1 }
 0x155   :  { %745 = vsyncpa [#allocation4 + $0x1], 1 }

</bundles_post_ra>
